<compile_context>
chip_gen: v7x
topology: tpu7x:2x2x1
jax: 0.10.0
libtpu: 0.0.40
codegen_flags: <defaults>
</compile_context>

<pallas_src>
import jax
import jax.numpy as jnp
from jax.experimental import pallas as pl
from jax.experimental.pallas import tpu as pltpu


def _linear_kernel(xt_ref, w_ref, b_ref, o_ref):
    # xt_ref: (F, TB) f32 in VMEM   (features on sublanes, batch on lanes)
    # w_ref : (F, 1)  f32 in VMEM   (broadcast over lanes by the VPU)
    # b_ref : (1, 1)  f32 in SMEM   (scalar bias)
    # o_ref : (1, TB) f32 in VMEM   (lane-dense output slab)
    prod = xt_ref[...] * w_ref[...]                                   # VPU
    o_ref[...] = jnp.sum(prod, axis=0, keepdims=True) + b_ref[0, 0]   # XLU reduce + VPU add


def regression_model_forward(x, w, b, *, tb=512):
    """x: (B, F) f32; w: (F, 1) f32; b: (1, 1) f32 -> (B, 1) f32."""
    B, F = x.shape
    x = x.astype(jnp.float32)
    w = w.astype(jnp.float32)
    b = jnp.reshape(b, (1, 1)).astype(jnp.float32)

    # Lane-dense layout: batch on the 128-wide lane axis.
    xt = x.T                                              # (F, B)

    if B <= tb:
        TB, Bp = B, B                                     # single full block
    else:
        TB = tb                                           # multiple of 128
        Bp = pl.cdiv(B, TB) * TB
        if Bp != B:                                       # pad batch to tile multiple
            xt = jnp.pad(xt, ((0, 0), (0, Bp - B)))

    grid = (Bp // TB,)

    # VMEM budget: double-buffered x tile + w + output tile, plus slack.
    tile_bytes = TB * F * 4
    vmem_limit = int(2 * tile_bytes + 2 * F * 4 + 2 * TB * 4 + (8 << 20))

    cost = pl.CostEstimate(
        flops=2 * B * F,
        transcendentals=0,
        bytes_accessed=B * F * 4 + F * 4 + 4 + B * 4,
    )

    out = pl.pallas_call(
        _linear_kernel,
        out_shape=jax.ShapeDtypeStruct((1, Bp), jnp.float32),
        grid=grid,
        in_specs=[
            pl.BlockSpec((F, TB), lambda i: (0, i)),      # x tile (batch on lanes)
            pl.BlockSpec((F, 1), lambda i: (0, 0)),       # weights, replicated over grid
            pl.BlockSpec(memory_space=pltpu.SMEM),        # bias scalar in SMEM
        ],
        out_specs=pl.BlockSpec((1, TB), lambda i: (0, i)),
        compiler_params=pltpu.CompilerParams(
            dimension_semantics=("parallel",),
            vmem_limit_bytes=vmem_limit,
        ),
        cost_estimate=cost,
    )(xt, w, b)

    return out[:, :B].T                                   # (B, 1)


def init_params(key, n_feats):
    # Deterministic init mimicking nn.Linear's U(-1/sqrt(fan_in), 1/sqrt(fan_in)).
    kw, kb = jax.random.split(key)
    bound = 1.0 / jnp.sqrt(jnp.float32(n_feats))
    w = jax.random.uniform(kw, (n_feats, 1), jnp.float32, -bound, bound)
    b = jax.random.uniform(kb, (1, 1), jnp.float32, -bound, bound)
    return w, b


if __name__ == "__main__":
    key = jax.random.PRNGKey(0)
    k_x, k_p, k_big = jax.random.split(key, 3)

    batch, n_feats, n_hidden = 8, 32, 16  # n_hidden unused by the module
    x = jax.random.normal(k_x, (batch, n_feats), jnp.float32)
    w, b = init_params(k_p, n_feats)

    # Shipped (toy) shape: single full block.
    y = regression_model_forward(x, w, b)
    jax.block_until_ready(y)
    y_ref = x @ w + b
    assert y.shape == (batch, 1)
    assert jnp.allclose(y, y_ref, atol=1e-5, rtol=1e-5)

    # Exercise the tiled + padded grid path (parallel batch tiles of 512 lanes).
    big_batch = 1030
    xb = jax.random.normal(k_big, (big_batch, n_feats), jnp.float32)
    yb = regression_model_forward(xb, w, b)
    jax.block_until_ready(yb)
    yb_ref = xb @ w + b
    assert yb.shape == (big_batch, 1)
    assert jnp.allclose(yb, yb_ref, atol=1e-4, rtol=1e-4)

    print("KERNEL_OK")
</pallas_src>

<mosaic_0001>
module attributes {stable_mosaic.version = 11 : i64} {
  func.func @_linear_kernel(%arg0: i32, %arg1: memref<32x8xf32, #tpu.memory_space<vmem>>, %arg2: memref<32x1xf32, #tpu.memory_space<vmem>>, %arg3: memref<1x1xf32, #tpu.memory_space<smem>>, %arg4: memref<1x8xf32, #tpu.memory_space<vmem>>) attributes {dimension_semantics = [#tpu.dimension_semantics<parallel>], iteration_bounds = array<i64: 1>, scalar_prefetch = 0 : i64, scratch_operands = 0 : i64, tpu.core_type = #tpu.core_type<tc>, window_params = [{transform_indices = @transform_0, window_bounds = array<i64: 32, 8>}, {pipeline_mode = #tpu.pipeline_mode<synchronous>, transform_indices = @transform_1, window_bounds = array<i64: 32, 1>}, {transform_indices = @transform_2, window_bounds = array<i64: 1, 1>}, {transform_indices = @transform_3, window_bounds = array<i64: 1, 8>}]} {
    %c0 = arith.constant 0 : index
    %c0_0 = arith.constant 0 : index
    %0 = vector.load %arg1[%c0, %c0_0] : memref<32x8xf32, #tpu.memory_space<vmem>>, vector<32x8xf32>
    %c0_1 = arith.constant 0 : index
    %c0_2 = arith.constant 0 : index
    %1 = vector.load %arg2[%c0_1, %c0_2] : memref<32x1xf32, #tpu.memory_space<vmem>>, vector<32x1xf32>
    %2 = vector.broadcast %1 : vector<32x1xf32> to vector<32x8xf32>
    %3 = arith.mulf %0, %2 : vector<32x8xf32>
    %cst = arith.constant dense<0.000000e+00> : vector<8xf32>
    %4 = vector.multi_reduction <add>, %3, %cst [0] : vector<32x8xf32> to vector<8xf32>
    %5 = vector.shape_cast %4 : vector<8xf32> to vector<1x8xf32>
    %c0_3 = arith.constant 0 : index
    %c0_4 = arith.constant 0 : index
    %6 = memref.load %arg3[%c0_3, %c0_4] : memref<1x1xf32, #tpu.memory_space<smem>>
    %7 = vector.broadcast %6 : f32 to vector<1x8xf32>
    %8 = arith.addf %5, %7 : vector<1x8xf32>
    %c0_5 = arith.constant 0 : index
    %c0_6 = arith.constant 0 : index
    %9 = vector.load %arg4[%c0_5, %c0_6] : memref<1x8xf32, #tpu.memory_space<vmem>>, vector<1x8xf32>
    tpu.vector_store %arg4[%c0_5, %c0_6], %8 {strides = array<i32>} : memref<1x8xf32, #tpu.memory_space<vmem>>, vector<1x8xf32>,
    return
  }
  func.func @transform_0(%arg0: i32) -> (i32, i32) {
    %c0_i32 = arith.constant 0 : i32
    %c0_i32_0 = arith.constant 0 : i32
    return %c0_i32, %arg0 : i32, i32
  }
  func.func @transform_1(%arg0: i32) -> (i32, i32) {
    %c0_i32 = arith.constant 0 : i32
    %c0_i32_0 = arith.constant 0 : i32
    %c0_i32_1 = arith.constant 0 : i32
    return %c0_i32, %c0_i32_0 : i32, i32
  }
  func.func @transform_2(%arg0: i32) -> (i32, i32) {
    %c0_i32 = arith.constant 0 : i32
    %c0_i32_0 = arith.constant 0 : i32
    %c0_i32_1 = arith.constant 0 : i32
    return %c0_i32, %c0_i32_0 : i32, i32
  }
  func.func @transform_3(%arg0: i32) -> (i32, i32) {
    %c0_i32 = arith.constant 0 : i32
    %c0_i32_0 = arith.constant 0 : i32
    return %c0_i32, %arg0 : i32, i32
  }
}

</mosaic_0001>

<bundles_post_ra>
// kernel: tpu_custom_call.1
= control target key start
LH: loop header
LB: loop body
LE: loop exit
PB: predicated region body
PF: predicated region fallthrough
CT: control target
= control target key end

     0   :  { %v109_v2 = vmov 0   ;;  %s170_s0 = inlined_call_operand.vmem [shape: f32[32,8], index: 0, kind: input, shape index: {}]   ;;  %s171_s1 = inlined_call_operand.vmem [shape: f32[32,1], index: 1, kind: input, shape index: {}]   ;;  %s172_s2 = inlined_call_operand.<no memory space> [shape: f32[1,1], index: 2, kind: input, shape index: {}]   ;;  %s173_s3 = inlined_call_operand.hbm [shape: f32[1,8], index: 3, kind: output, shape index: {}]  }
   0x1   :  { %v22_v0 = vld [vmem:[%s171_s1 + $0x10] sm:$0xff]  ;;  %v20_v1 = vld [vmem:[%s171_s1] sm:$0xff]  ;;  %84 = vset.pattern.permute.xlu1 %v109_v2  ;;  %83 = vset.pattern.permute.xlu0 %v109_v2 }
   0x2   :  { %36 = vperm.xlu1 %84, %v22_v0   ;;  %26 = vperm.xlu0 %83, %v20_v1  }
   0x3   :  { %9 = vsyncpa [#allocation4], 0  ;;  %v23_v3 = vld [vmem:[%s171_s1 + $0x18] sm:$0xff]  ;;  %v21_v4 = vld [vmem:[%s171_s1 + $0x8] sm:$0xff]  ;;  %vm48_vm0 = vcmask 64512   ;;  %v63_v29 = vstv %s172_s2  ;;  %vm65_vm1 = vcmask 57344  }
   0x4   :  { %v16_v7 = vld [vmem:[%s170_s0] sm:$0xff]  ;;  %v18_v8 = vld [vmem:[%s170_s0 + $0x10] sm:$0xff]  ;;  %v17_v9 = vld [vmem:[%s170_s0 + $0x8] sm:$0xff] }
   0x5   :  { %v19_v12 = vld [vmem:[%s170_s0 + $0x18] sm:$0xff]  ;;  %s110_s0 = smov [#allocation3]  }
   0x6   :  { %41 = vperm.xlu1 %84, %v23_v3   ;;  %31 = vperm.xlu0 %83, %v21_v4   ;;  %s73_s29 = sshll.u32 %s110_s0, 4  ;;  %s74_s29 = int_to_ptr.vmem [resolvable:$true] %s73_s29 }
   0x7   :  { %s85_s30 = scalar_lea.vmem %s74_s29, 16  ;;  %s89_s4 = scalar_lea.vmem %s74_s29, 32 }
   0x8   :  { %p86_p0 = scmp.ne.s32.totalorder %s74_s29, %s85_s30  ;;  %p90_p1 = scmp.lt.s32.totalorder %s74_s29, %s74_s29 }
   0x9   :  { %p91_p2 = scmp.lt.s32.totalorder %s89_s4, %s85_s30 }
   0xb   :  { %p92_p3 = por %p91_p2, %p90_p1 }
   0xd   :  { %p93_p4 = pnand %p92_p3, %p86_p0 }
  0x81   :  { %v37_v5 = vpop.permute.xlu1 %36  ;;  %v27_v6 = vpop.permute.xlu0 %26 }
  0x82   :  { %v44_v10 = vmul.f32 %v27_v6, %v16_v7  ;;  %v46_v14 = vmul.f32 %v37_v5, %v18_v8 }
  0x84   :  { %v49_v16 = vsel %vm48_vm0, %v44_v10, 0.0  ;;  %v52_v20 = vsel %vm48_vm0, %v46_v14, 0.0 }
  0x85   :  { %v42_v11 = vpop.permute.xlu1 %41  ;;  %v32_v13 = vpop.permute.xlu0 %31 }
  0x86   :  { %v45_v15 = vmul.f32 %v32_v13, %v17_v9  ;;  %v47_v17 = vmul.f32 %v42_v11, %v19_v12 }
  0x88   :  { %v50_v18 = vsel %vm48_vm0, %v45_v15, 0.0  ;;  %v54_v22 = vsel %vm48_vm0, %v47_v17, 0.0 }
  0x89   :  { %v51_v19 = vadd.f32 %v50_v18, %v49_v16 }
  0x8b   :  { %v53_v21 = vadd.f32 %v52_v20, %v51_v19 }
  0x8d   :  { %v55_v23 = vadd.f32 %v54_v22, %v53_v21 }
  0x8f   :  { %v56_v24 = vrot.slane %v55_v23, 4 }
  0x91   :  { %v57_v25 = vadd.f32 %v56_v24, %v55_v23 }
  0x93   :  { %v58_v26 = vrot.slane %v57_v25, 2 }
  0x95   :  { %v59_v27 = vadd.f32 %v58_v26, %v57_v25 }
  0x97   :  { %v60_v28 = vrot.slane %v59_v27, 1 }
  0x99   :  { %v61_v30 = vadd.f32 %v60_v28, %v59_v27 }
  0x9b   :  { %v64_v31 = vadd.f32 %v63_v29, %v61_v30 }
  0x9d   :  { %66 = vst.msk [vmem:[#allocation3] sm:$0x1] %vm65_vm1, %v64_v31 }
  0x9e   :  { %96 = shalt.err (!%p93_p4)
}
  0x9f   :  { %s97_s7 = scalar_lea.hbm %s173_s3, 16 }
  0xa0   :  { %p98_p5 = scmp.ne.s32.totalorder %s173_s3, %s97_s7  ;;  %p101_p6 = scmp.lt.u32.totalorder %s97_s7, %s173_s3 }
  0xa2   :  { %p103_p7 = pnand %p101_p6, %p98_p5 }
  0xa4   :  { %106 = shalt.err (!%p103_p7)
}
  0xa5   :  { %76 = dma.vmem_to_hbm [thread:$0]  %s74_s29, 16, %s173_s3, [#allocation4]  }
  0xa6   :  { %107 = dma.done.wait [#allocation4], 16  }
  0xa7   :  { %108 = vsyncadd [#allocation4], 4294967280 }
  0xa8   :  { %80 = vsyncpa [#allocation4], 1 }

</bundles_post_ra>
